<compile_context>
chip_gen: v7x
topology: tpu7x:2x2x1
jax: 0.10.0
libtpu: 0.0.40
codegen_flags: <defaults>
</compile_context>

<pallas_src>
import functools

import jax
import jax.numpy as jnp
from jax import lax
from jax.experimental import pallas as pl
from jax.experimental.pallas import tpu as pltpu


# ---------------------------------------------------------------------------
# Helpers
# ---------------------------------------------------------------------------

def _pick_tile(n, candidates=(512, 256, 128)):
    """Largest candidate tile that evenly divides n, else the full extent."""
    for c in candidates:
        if n % c == 0:
            return c
    return n


# ---------------------------------------------------------------------------
# Fused Pallas kernel: QKV projections + multi-head attention + out projection
# ---------------------------------------------------------------------------

def _fused_attention_layer_kernel(xq_ref, xk_ref, xv_ref,
                                  wq_ref, wk_ref, wv_ref, wo_ref,
                                  bq_ref, bk_ref, bv_ref, bo_ref,
                                  o_ref, *, n_heads, compute_dtype):
    cd = compute_dtype

    # One batch element / one L-tile of activations.
    xq = xq_ref[0].astype(cd)          # [Lt, d_model]
    xk = xk_ref[0].astype(cd)          # [S,  d_model]
    xv = xv_ref[0].astype(cd)          # [S,  d_model]

    # QKV projections. Weights are pre-transposed [Din, Dout]; f32 accumulation,
    # biases added in f32.
    q = jnp.dot(xq, wq_ref[...], preferred_element_type=jnp.float32) + bq_ref[...]
    k = jnp.dot(xk, wk_ref[...], preferred_element_type=jnp.float32) + bk_ref[...]
    v = jnp.dot(xv, wv_ref[...], preferred_element_type=jnp.float32) + bv_ref[...]

    H = n_heads
    d_k = q.shape[-1] // H
    d_v = v.shape[-1] // H
    scale = jnp.float32(1.0) / jnp.sqrt(jnp.float32(d_k))

    outs = []
    for h in range(H):                                        # H is small & static
        q_h = q[:, h * d_k:(h + 1) * d_k].astype(cd)          # [Lt, d_k]
        k_h = k[:, h * d_k:(h + 1) * d_k].astype(cd)          # [S,  d_k]
        v_h = v[:, h * d_v:(h + 1) * d_v].astype(cd)          # [S,  d_v]

        # s = q_h @ k_hᵀ without an explicit transpose: contract last dims.
        s = lax.dot_general(q_h, k_h, (((1,), (1,)), ((), ())),
                            preferred_element_type=jnp.float32) * scale   # [Lt, S]

        # Softmax in float32 (v5e-safe); denominator via EUP approximate reciprocal.
        s = s - jnp.max(s, axis=-1, keepdims=True)
        p = jnp.exp(s)
        p = p * pl.reciprocal(jnp.sum(p, axis=-1, keepdims=True), approx=True)

        outs.append(
            lax.dot_general(p.astype(cd), v_h, (((1,), (0,)), ((), ())),
                            preferred_element_type=jnp.float32))          # [Lt, d_v]

    out = jnp.concatenate(outs, axis=-1).astype(cd)            # [Lt, H*d_v]

    # Output projection (lane-dense [Lt, d_model] store).
    y = jnp.dot(out, wo_ref[...], preferred_element_type=jnp.float32) + bo_ref[...]
    o_ref[0] = y.astype(o_ref.dtype)


# ---------------------------------------------------------------------------
# AttentionLayer forward
# ---------------------------------------------------------------------------

def init_attention_layer_params(key, d_model, n_heads, d_keys=None, d_values=None):
    d_keys = d_keys or d_model // n_heads
    d_values = d_values or d_model // n_heads
    ks = jax.random.split(key, 8)
    std = 0.02
    # NOTE: weights stored as [Din, Dout] (pre-transposed vs. torch.nn.Linear's
    # [Dout, Din]) so the kernel feeds the MXU without any in-kernel transpose.
    return {
        "wq": jax.random.normal(ks[0], (d_model, d_keys * n_heads), jnp.float32) * std,
        "bq": jax.random.normal(ks[1], (d_keys * n_heads,), jnp.float32) * std,
        "wk": jax.random.normal(ks[2], (d_model, d_keys * n_heads), jnp.float32) * std,
        "bk": jax.random.normal(ks[3], (d_keys * n_heads,), jnp.float32) * std,
        "wv": jax.random.normal(ks[4], (d_model, d_values * n_heads), jnp.float32) * std,
        "bv": jax.random.normal(ks[5], (d_values * n_heads,), jnp.float32) * std,
        "wo": jax.random.normal(ks[6], (d_values * n_heads, d_model), jnp.float32) * std,
        "bo": jax.random.normal(ks[7], (d_model,), jnp.float32) * std,
    }


def attention_layer_forward(params, queries, keys, values, n_heads,
                            attn_mask=None, tau=None, delta=None,
                            compute_dtype=jnp.bfloat16):
    """Returns (y, None) matching AttentionLayer.forward with FullAttention
    (mask_flag=False, output_attention=False, dropout in eval mode).
    attn_mask/tau/delta are accepted for API parity but unused."""
    del attn_mask, tau, delta
    B, L, d_model = queries.shape
    S = keys.shape[1]
    H = n_heads

    d_qk = params["wq"].shape[1]      # H * d_keys
    d_vv = params["wv"].shape[1]      # H * d_values

    cd = compute_dtype
    # Cast weights once outside the kernel (halves weight DMA traffic for bf16).
    wq = params["wq"].astype(cd)
    wk = params["wk"].astype(cd)
    wv = params["wv"].astype(cd)
    wo = params["wo"].astype(cd)
    # Biases stay f32: they are added to the f32 accumulator.
    bq = params["bq"].reshape(1, d_qk).astype(jnp.float32)
    bk = params["bk"].reshape(1, d_qk).astype(jnp.float32)
    bv = params["bv"].reshape(1, d_vv).astype(jnp.float32)
    bo = params["bo"].reshape(1, d_model).astype(jnp.float32)

    lt = _pick_tile(L)                # 128-multiple tile when L allows, else full L
    n_lt = L // lt

    kernel = functools.partial(_fused_attention_layer_kernel,
                               n_heads=H, compute_dtype=cd)

    const = lambda b, l: (0, 0)       # weights/biases: resident block

    y = pl.pallas_call(
        kernel,
        out_shape=jax.ShapeDtypeStruct((B, L, d_model), queries.dtype),
        grid=(B, n_lt),
        in_specs=[
            pl.BlockSpec((1, lt, d_model), lambda b, l: (b, l, 0)),   # queries tile
            pl.BlockSpec((1, S, d_model), lambda b, l: (b, 0, 0)),    # keys (per batch)
            pl.BlockSpec((1, S, d_model), lambda b, l: (b, 0, 0)),    # values (per batch)
            pl.BlockSpec((d_model, d_qk), const),                     # wq
            pl.BlockSpec((d_model, d_qk), const),                     # wk
            pl.BlockSpec((d_model, d_vv), const),                     # wv
            pl.BlockSpec((d_vv, d_model), const),                     # wo
            pl.BlockSpec((1, d_qk), const),                           # bq
            pl.BlockSpec((1, d_qk), const),                           # bk
            pl.BlockSpec((1, d_vv), const),                           # bv
            pl.BlockSpec((1, d_model), const),                        # bo
        ],
        out_specs=pl.BlockSpec((1, lt, d_model), lambda b, l: (b, l, 0)),
        compiler_params=pltpu.CompilerParams(
            dimension_semantics=("parallel", "parallel")),
    )(queries, keys, values, wq, wk, wv, wo, bq, bk, bv, bo)

    return y, None   # output_attention=False -> attn is None


# ---------------------------------------------------------------------------
# Pure-JAX reference (for sanity check)
# ---------------------------------------------------------------------------

def _reference_forward(params, queries, keys, values, n_heads):
    B, L, d_model = queries.shape
    S = keys.shape[1]
    H = n_heads
    q = (queries @ params["wq"] + params["bq"]).reshape(B, L, H, -1)
    k = (keys @ params["wk"] + params["bk"]).reshape(B, S, H, -1)
    v = (values @ params["wv"] + params["bv"]).reshape(B, S, H, -1)
    E = q.shape[-1]
    scores = jnp.einsum("blhe,bshe->bhls", q, k)
    A = jax.nn.softmax(scores / jnp.sqrt(jnp.float32(E)), axis=-1)
    out = jnp.einsum("bhls,bshd->blhd", A, v).reshape(B, L, -1)
    return out @ params["wo"] + params["bo"]


# ---------------------------------------------------------------------------
# Main
# ---------------------------------------------------------------------------

if __name__ == "__main__":
    B, L, S = 2, 8, 8
    d_model, n_heads = 32, 4

    key = jax.random.PRNGKey(0)
    kp, kq, kk, kv = jax.random.split(key, 4)

    params = init_attention_layer_params(kp, d_model, n_heads)
    queries = jax.random.normal(kq, (B, L, d_model), jnp.float32)
    keys = jax.random.normal(kk, (B, S, d_model), jnp.float32)
    values = jax.random.normal(kv, (B, S, d_model), jnp.float32)

    ref = _reference_forward(params, queries, keys, values, n_heads)

    # bf16 MXU inputs + f32 accumulation (recommended path on v6e/v7x).
    out_bf16, attn = attention_layer_forward(params, queries, keys, values, n_heads,
                                             compute_dtype=jnp.bfloat16)
    out_bf16 = jax.block_until_ready(out_bf16)
    assert out_bf16.shape == (B, L, d_model)
    assert attn is None
    assert jnp.allclose(out_bf16, ref, atol=5e-3, rtol=5e-2), "bf16 path mismatch vs reference"

    # Full-f32 compute path (v5e / accuracy-sensitive use).
    out_f32, _ = attention_layer_forward(params, queries, keys, values, n_heads,
                                         compute_dtype=jnp.float32)
    out_f32 = jax.block_until_ready(out_f32)
    assert jnp.allclose(out_f32, ref, atol=1e-3, rtol=1e-2), "f32 path mismatch vs reference"

    print("KERNEL_OK")
</pallas_src>

<mosaic_0001>
module attributes {stable_mosaic.version = 11 : i64} {
  func.func @_fused_attention_layer_kernel(%arg0: i32, %arg1: i32, %arg2: memref<1x8x32xf32, #tpu.memory_space<vmem>>, %arg3: memref<1x8x32xf32, #tpu.memory_space<vmem>>, %arg4: memref<1x8x32xf32, #tpu.memory_space<vmem>>, %arg5: memref<32x32xbf16, #tpu.memory_space<vmem>>, %arg6: memref<32x32xbf16, #tpu.memory_space<vmem>>, %arg7: memref<32x32xbf16, #tpu.memory_space<vmem>>, %arg8: memref<32x32xbf16, #tpu.memory_space<vmem>>, %arg9: memref<1x32xf32, #tpu.memory_space<vmem>>, %arg10: memref<1x32xf32, #tpu.memory_space<vmem>>, %arg11: memref<1x32xf32, #tpu.memory_space<vmem>>, %arg12: memref<1x32xf32, #tpu.memory_space<vmem>>, %arg13: memref<1x8x32xf32, #tpu.memory_space<vmem>>) attributes {dimension_semantics = [#tpu.dimension_semantics<parallel>, #tpu.dimension_semantics<parallel>], iteration_bounds = array<i64: 2, 1>, scalar_prefetch = 0 : i64, scratch_operands = 0 : i64, tpu.core_type = #tpu.core_type<tc>, window_params = [{transform_indices = @transform_0, window_bounds = array<i64: 1, 8, 32>}, {transform_indices = @transform_1, window_bounds = array<i64: 1, 8, 32>}, {transform_indices = @transform_2, window_bounds = array<i64: 1, 8, 32>}, {pipeline_mode = #tpu.pipeline_mode<synchronous>, transform_indices = @transform_3, window_bounds = array<i64: 32, 32>}, {pipeline_mode = #tpu.pipeline_mode<synchronous>, transform_indices = @transform_4, window_bounds = array<i64: 32, 32>}, {pipeline_mode = #tpu.pipeline_mode<synchronous>, transform_indices = @transform_5, window_bounds = array<i64: 32, 32>}, {pipeline_mode = #tpu.pipeline_mode<synchronous>, transform_indices = @transform_6, window_bounds = array<i64: 32, 32>}, {pipeline_mode = #tpu.pipeline_mode<synchronous>, transform_indices = @transform_7, window_bounds = array<i64: 1, 32>}, {pipeline_mode = #tpu.pipeline_mode<synchronous>, transform_indices = @transform_8, window_bounds = array<i64: 1, 32>}, {pipeline_mode = #tpu.pipeline_mode<synchronous>, transform_indices = @transform_9, window_bounds = array<i64: 1, 32>}, {pipeline_mode = #tpu.pipeline_mode<synchronous>, transform_indices = @transform_10, window_bounds = array<i64: 1, 32>}, {transform_indices = @transform_11, window_bounds = array<i64: 1, 8, 32>}]} {
    %c0 = arith.constant 0 : index
    %c0_0 = arith.constant 0 : index
    %c0_1 = arith.constant 0 : index
    %0 = vector.load %arg2[%c0, %c0_0, %c0_1] : memref<1x8x32xf32, #tpu.memory_space<vmem>>, vector<1x8x32xf32>
    %1 = vector.shape_cast %0 : vector<1x8x32xf32> to vector<8x32xf32>
    %2 = arith.truncf %1 : vector<8x32xf32> to vector<8x32xbf16>
    %c0_2 = arith.constant 0 : index
    %c0_3 = arith.constant 0 : index
    %c0_4 = arith.constant 0 : index
    %3 = vector.load %arg3[%c0_2, %c0_3, %c0_4] : memref<1x8x32xf32, #tpu.memory_space<vmem>>, vector<1x8x32xf32>
    %4 = vector.shape_cast %3 : vector<1x8x32xf32> to vector<8x32xf32>
    %5 = arith.truncf %4 : vector<8x32xf32> to vector<8x32xbf16>
    %c0_5 = arith.constant 0 : index
    %c0_6 = arith.constant 0 : index
    %c0_7 = arith.constant 0 : index
    %6 = vector.load %arg4[%c0_5, %c0_6, %c0_7] : memref<1x8x32xf32, #tpu.memory_space<vmem>>, vector<1x8x32xf32>
    %7 = vector.shape_cast %6 : vector<1x8x32xf32> to vector<8x32xf32>
    %8 = arith.truncf %7 : vector<8x32xf32> to vector<8x32xbf16>
    %c0_8 = arith.constant 0 : index
    %c0_9 = arith.constant 0 : index
    %9 = vector.load %arg5[%c0_8, %c0_9] : memref<32x32xbf16, #tpu.memory_space<vmem>>, vector<32x32xbf16>
    %cst = arith.constant dense<0.000000e+00> : vector<8x32xf32>
    %10 = tpu.matmul %2, %9, %cst {dimension_numbers = #tpu.dot_dimension_numbers<[1], [0], [0], [1], [0, 0, 1, 1], [], []>} : vector<8x32xbf16>, vector<32x32xbf16>, vector<8x32xf32> -> vector<8x32xf32>
    %c0_10 = arith.constant 0 : index
    %c0_11 = arith.constant 0 : index
    %11 = vector.load %arg9[%c0_10, %c0_11] : memref<1x32xf32, #tpu.memory_space<vmem>>, vector<1x32xf32>
    %12 = vector.broadcast %11 : vector<1x32xf32> to vector<8x32xf32>
    %13 = arith.addf %10, %12 : vector<8x32xf32>
    %c0_12 = arith.constant 0 : index
    %c0_13 = arith.constant 0 : index
    %14 = vector.load %arg6[%c0_12, %c0_13] : memref<32x32xbf16, #tpu.memory_space<vmem>>, vector<32x32xbf16>
    %cst_14 = arith.constant dense<0.000000e+00> : vector<8x32xf32>
    %15 = tpu.matmul %5, %14, %cst_14 {dimension_numbers = #tpu.dot_dimension_numbers<[1], [0], [0], [1], [0, 0, 1, 1], [], []>} : vector<8x32xbf16>, vector<32x32xbf16>, vector<8x32xf32> -> vector<8x32xf32>
    %c0_15 = arith.constant 0 : index
    %c0_16 = arith.constant 0 : index
    %16 = vector.load %arg10[%c0_15, %c0_16] : memref<1x32xf32, #tpu.memory_space<vmem>>, vector<1x32xf32>
    %17 = vector.broadcast %16 : vector<1x32xf32> to vector<8x32xf32>
    %18 = arith.addf %15, %17 : vector<8x32xf32>
    %c0_17 = arith.constant 0 : index
    %c0_18 = arith.constant 0 : index
    %19 = vector.load %arg7[%c0_17, %c0_18] : memref<32x32xbf16, #tpu.memory_space<vmem>>, vector<32x32xbf16>
    %cst_19 = arith.constant dense<0.000000e+00> : vector<8x32xf32>
    %20 = tpu.matmul %8, %19, %cst_19 {dimension_numbers = #tpu.dot_dimension_numbers<[1], [0], [0], [1], [0, 0, 1, 1], [], []>} : vector<8x32xbf16>, vector<32x32xbf16>, vector<8x32xf32> -> vector<8x32xf32>
    %c0_20 = arith.constant 0 : index
    %c0_21 = arith.constant 0 : index
    %21 = vector.load %arg11[%c0_20, %c0_21] : memref<1x32xf32, #tpu.memory_space<vmem>>, vector<1x32xf32>
    %22 = vector.broadcast %21 : vector<1x32xf32> to vector<8x32xf32>
    %23 = arith.addf %20, %22 : vector<8x32xf32>
    %cst_22 = arith.constant 8.000000e+00 : f32
    %24 = math.sqrt %cst_22 : f32
    %cst_23 = arith.constant 1.000000e+00 : f32
    %25 = arith.divf %cst_23, %24 : f32
    %26 = vector.extract_strided_slice %13 {offsets = [0, 0], sizes = [8, 8], strides = [1, 1]} : vector<8x32xf32> to vector<8x8xf32>
    %27 = arith.truncf %26 : vector<8x8xf32> to vector<8x8xbf16>
    %28 = vector.extract_strided_slice %18 {offsets = [0, 0], sizes = [8, 8], strides = [1, 1]} : vector<8x32xf32> to vector<8x8xf32>
    %29 = arith.truncf %28 : vector<8x8xf32> to vector<8x8xbf16>
    %30 = vector.extract_strided_slice %23 {offsets = [0, 0], sizes = [8, 8], strides = [1, 1]} : vector<8x32xf32> to vector<8x8xf32>
    %31 = arith.truncf %30 : vector<8x8xf32> to vector<8x8xbf16>
    %cst_24 = arith.constant dense<0.000000e+00> : vector<8x8xf32>
    %32 = tpu.matmul %27, %29, %cst_24 {dimension_numbers = #tpu.dot_dimension_numbers<[1], [1], [0], [0], [0, 0, 1, 0], [], []>} : vector<8x8xbf16>, vector<8x8xbf16>, vector<8x8xf32> -> vector<8x8xf32>
    %33 = vector.broadcast %25 : f32 to vector<8x8xf32>
    %34 = arith.mulf %32, %33 : vector<8x8xf32>
    %cst_25 = arith.constant dense<0xFF800000> : vector<8xf32>
    %35 = vector.multi_reduction <maximumf>, %34, %cst_25 [1] : vector<8x8xf32> to vector<8xf32>
    %36 = vector.shape_cast %35 : vector<8xf32> to vector<8x1xf32>
    %37 = vector.broadcast %36 : vector<8x1xf32> to vector<8x8xf32>
    %38 = arith.subf %34, %37 : vector<8x8xf32>
    %39 = math.exp %38 : vector<8x8xf32>
    %cst_26 = arith.constant dense<0.000000e+00> : vector<8xf32>
    %40 = vector.multi_reduction <add>, %39, %cst_26 [1] : vector<8x8xf32> to vector<8xf32>
    %41 = vector.shape_cast %40 : vector<8xf32> to vector<8x1xf32>
    %42 = tpu.reciprocal %41 {approx = true} : vector<8x1xf32> -> vector<8x1xf32>
    %43 = vector.broadcast %42 : vector<8x1xf32> to vector<8x8xf32>
    %44 = arith.mulf %39, %43 : vector<8x8xf32>
    %45 = arith.truncf %44 : vector<8x8xf32> to vector<8x8xbf16>
    %cst_27 = arith.constant dense<0.000000e+00> : vector<8x8xf32>
    %46 = tpu.matmul %45, %31, %cst_27 {dimension_numbers = #tpu.dot_dimension_numbers<[1], [0], [0], [1], [0, 0, 1, 1], [], []>} : vector<8x8xbf16>, vector<8x8xbf16>, vector<8x8xf32> -> vector<8x8xf32>
    %47 = vector.extract_strided_slice %13 {offsets = [0, 8], sizes = [8, 8], strides = [1, 1]} : vector<8x32xf32> to vector<8x8xf32>
    %48 = arith.truncf %47 : vector<8x8xf32> to vector<8x8xbf16>
    %49 = vector.extract_strided_slice %18 {offsets = [0, 8], sizes = [8, 8], strides = [1, 1]} : vector<8x32xf32> to vector<8x8xf32>
    %50 = arith.truncf %49 : vector<8x8xf32> to vector<8x8xbf16>
    %51 = vector.extract_strided_slice %23 {offsets = [0, 8], sizes = [8, 8], strides = [1, 1]} : vector<8x32xf32> to vector<8x8xf32>
    %52 = arith.truncf %51 : vector<8x8xf32> to vector<8x8xbf16>
    %cst_28 = arith.constant dense<0.000000e+00> : vector<8x8xf32>
    %53 = tpu.matmul %48, %50, %cst_28 {dimension_numbers = #tpu.dot_dimension_numbers<[1], [1], [0], [0], [0, 0, 1, 0], [], []>} : vector<8x8xbf16>, vector<8x8xbf16>, vector<8x8xf32> -> vector<8x8xf32>
    %54 = vector.broadcast %25 : f32 to vector<8x8xf32>
    %55 = arith.mulf %53, %54 : vector<8x8xf32>
    %cst_29 = arith.constant dense<0xFF800000> : vector<8xf32>
    %56 = vector.multi_reduction <maximumf>, %55, %cst_29 [1] : vector<8x8xf32> to vector<8xf32>
    %57 = vector.shape_cast %56 : vector<8xf32> to vector<8x1xf32>
    %58 = vector.broadcast %57 : vector<8x1xf32> to vector<8x8xf32>
    %59 = arith.subf %55, %58 : vector<8x8xf32>
    %60 = math.exp %59 : vector<8x8xf32>
    %cst_30 = arith.constant dense<0.000000e+00> : vector<8xf32>
    %61 = vector.multi_reduction <add>, %60, %cst_30 [1] : vector<8x8xf32> to vector<8xf32>
    %62 = vector.shape_cast %61 : vector<8xf32> to vector<8x1xf32>
    %63 = tpu.reciprocal %62 {approx = true} : vector<8x1xf32> -> vector<8x1xf32>
    %64 = vector.broadcast %63 : vector<8x1xf32> to vector<8x8xf32>
    %65 = arith.mulf %60, %64 : vector<8x8xf32>
    %66 = arith.truncf %65 : vector<8x8xf32> to vector<8x8xbf16>
    %cst_31 = arith.constant dense<0.000000e+00> : vector<8x8xf32>
    %67 = tpu.matmul %66, %52, %cst_31 {dimension_numbers = #tpu.dot_dimension_numbers<[1], [0], [0], [1], [0, 0, 1, 1], [], []>} : vector<8x8xbf16>, vector<8x8xbf16>, vector<8x8xf32> -> vector<8x8xf32>
    %68 = vector.extract_strided_slice %13 {offsets = [0, 16], sizes = [8, 8], strides = [1, 1]} : vector<8x32xf32> to vector<8x8xf32>
    %69 = arith.truncf %68 : vector<8x8xf32> to vector<8x8xbf16>
    %70 = vector.extract_strided_slice %18 {offsets = [0, 16], sizes = [8, 8], strides = [1, 1]} : vector<8x32xf32> to vector<8x8xf32>
    %71 = arith.truncf %70 : vector<8x8xf32> to vector<8x8xbf16>
    %72 = vector.extract_strided_slice %23 {offsets = [0, 16], sizes = [8, 8], strides = [1, 1]} : vector<8x32xf32> to vector<8x8xf32>
    %73 = arith.truncf %72 : vector<8x8xf32> to vector<8x8xbf16>
    %cst_32 = arith.constant dense<0.000000e+00> : vector<8x8xf32>
    %74 = tpu.matmul %69, %71, %cst_32 {dimension_numbers = #tpu.dot_dimension_numbers<[1], [1], [0], [0], [0, 0, 1, 0], [], []>} : vector<8x8xbf16>, vector<8x8xbf16>, vector<8x8xf32> -> vector<8x8xf32>
    %75 = vector.broadcast %25 : f32 to vector<8x8xf32>
    %76 = arith.mulf %74, %75 : vector<8x8xf32>
    %cst_33 = arith.constant dense<0xFF800000> : vector<8xf32>
    %77 = vector.multi_reduction <maximumf>, %76, %cst_33 [1] : vector<8x8xf32> to vector<8xf32>
    %78 = vector.shape_cast %77 : vector<8xf32> to vector<8x1xf32>
    %79 = vector.broadcast %78 : vector<8x1xf32> to vector<8x8xf32>
    %80 = arith.subf %76, %79 : vector<8x8xf32>
    %81 = math.exp %80 : vector<8x8xf32>
    %cst_34 = arith.constant dense<0.000000e+00> : vector<8xf32>
    %82 = vector.multi_reduction <add>, %81, %cst_34 [1] : vector<8x8xf32> to vector<8xf32>
    %83 = vector.shape_cast %82 : vector<8xf32> to vector<8x1xf32>
    %84 = tpu.reciprocal %83 {approx = true} : vector<8x1xf32> -> vector<8x1xf32>
    %85 = vector.broadcast %84 : vector<8x1xf32> to vector<8x8xf32>
    %86 = arith.mulf %81, %85 : vector<8x8xf32>
    %87 = arith.truncf %86 : vector<8x8xf32> to vector<8x8xbf16>
    %cst_35 = arith.constant dense<0.000000e+00> : vector<8x8xf32>
    %88 = tpu.matmul %87, %73, %cst_35 {dimension_numbers = #tpu.dot_dimension_numbers<[1], [0], [0], [1], [0, 0, 1, 1], [], []>} : vector<8x8xbf16>, vector<8x8xbf16>, vector<8x8xf32> -> vector<8x8xf32>
    %89 = vector.extract_strided_slice %13 {offsets = [0, 24], sizes = [8, 8], strides = [1, 1]} : vector<8x32xf32> to vector<8x8xf32>
    %90 = arith.truncf %89 : vector<8x8xf32> to vector<8x8xbf16>
    %91 = vector.extract_strided_slice %18 {offsets = [0, 24], sizes = [8, 8], strides = [1, 1]} : vector<8x32xf32> to vector<8x8xf32>
    %92 = arith.truncf %91 : vector<8x8xf32> to vector<8x8xbf16>
    %93 = vector.extract_strided_slice %23 {offsets = [0, 24], sizes = [8, 8], strides = [1, 1]} : vector<8x32xf32> to vector<8x8xf32>
    %94 = arith.truncf %93 : vector<8x8xf32> to vector<8x8xbf16>
    %cst_36 = arith.constant dense<0.000000e+00> : vector<8x8xf32>
    %95 = tpu.matmul %90, %92, %cst_36 {dimension_numbers = #tpu.dot_dimension_numbers<[1], [1], [0], [0], [0, 0, 1, 0], [], []>} : vector<8x8xbf16>, vector<8x8xbf16>, vector<8x8xf32> -> vector<8x8xf32>
    %96 = vector.broadcast %25 : f32 to vector<8x8xf32>
    %97 = arith.mulf %95, %96 : vector<8x8xf32>
    %cst_37 = arith.constant dense<0xFF800000> : vector<8xf32>
    %98 = vector.multi_reduction <maximumf>, %97, %cst_37 [1] : vector<8x8xf32> to vector<8xf32>
    %99 = vector.shape_cast %98 : vector<8xf32> to vector<8x1xf32>
    %100 = vector.broadcast %99 : vector<8x1xf32> to vector<8x8xf32>
    %101 = arith.subf %97, %100 : vector<8x8xf32>
    %102 = math.exp %101 : vector<8x8xf32>
    %cst_38 = arith.constant dense<0.000000e+00> : vector<8xf32>
    %103 = vector.multi_reduction <add>, %102, %cst_38 [1] : vector<8x8xf32> to vector<8xf32>
    %104 = vector.shape_cast %103 : vector<8xf32> to vector<8x1xf32>
    %105 = tpu.reciprocal %104 {approx = true} : vector<8x1xf32> -> vector<8x1xf32>
    %106 = vector.broadcast %105 : vector<8x1xf32> to vector<8x8xf32>
    %107 = arith.mulf %102, %106 : vector<8x8xf32>
    %108 = arith.truncf %107 : vector<8x8xf32> to vector<8x8xbf16>
    %cst_39 = arith.constant dense<0.000000e+00> : vector<8x8xf32>
    %109 = tpu.matmul %108, %94, %cst_39 {dimension_numbers = #tpu.dot_dimension_numbers<[1], [0], [0], [1], [0, 0, 1, 1], [], []>} : vector<8x8xbf16>, vector<8x8xbf16>, vector<8x8xf32> -> vector<8x8xf32>
    %110 = tpu.concatenate %46, %67, %88, %109 in 1 : vector<8x8xf32>, vector<8x8xf32>, vector<8x8xf32>, vector<8x8xf32> -> vector<8x32xf32>
    %111 = arith.truncf %110 : vector<8x32xf32> to vector<8x32xbf16>
    %c0_40 = arith.constant 0 : index
    %c0_41 = arith.constant 0 : index
    %112 = vector.load %arg8[%c0_40, %c0_41] : memref<32x32xbf16, #tpu.memory_space<vmem>>, vector<32x32xbf16>
    %cst_42 = arith.constant dense<0.000000e+00> : vector<8x32xf32>
    %113 = tpu.matmul %111, %112, %cst_42 {dimension_numbers = #tpu.dot_dimension_numbers<[1], [0], [0], [1], [0, 0, 1, 1], [], []>} : vector<8x32xbf16>, vector<32x32xbf16>, vector<8x32xf32> -> vector<8x32xf32>
    %c0_43 = arith.constant 0 : index
    %c0_44 = arith.constant 0 : index
    %114 = vector.load %arg12[%c0_43, %c0_44] : memref<1x32xf32, #tpu.memory_space<vmem>>, vector<1x32xf32>
    %115 = vector.broadcast %114 : vector<1x32xf32> to vector<8x32xf32>
    %116 = arith.addf %113, %115 : vector<8x32xf32>
    %c0_45 = arith.constant 0 : index
    %c0_46 = arith.constant 0 : index
    %c0_47 = arith.constant 0 : index
    %117 = vector.load %arg13[%c0_45, %c0_46, %c0_47] : memref<1x8x32xf32, #tpu.memory_space<vmem>>, vector<1x8x32xf32>
    %118 = vector.shape_cast %117 : vector<1x8x32xf32> to vector<8x32xf32>
    %119 = vector.shape_cast %116 : vector<8x32xf32> to vector<1x8x32xf32>
    tpu.vector_store %arg13[%c0_45, %c0_46, %c0_47], %119 {strides = array<i32>} : memref<1x8x32xf32, #tpu.memory_space<vmem>>, vector<1x8x32xf32>,
    return
  }
  func.func @transform_0(%arg0: i32, %arg1: i32) -> (i32, i32, i32) {
    %c0_i32 = arith.constant 0 : i32
    %c0_i32_0 = arith.constant 0 : i32
    return %arg0, %arg1, %c0_i32 : i32, i32, i32
  }
  func.func @transform_1(%arg0: i32, %arg1: i32) -> (i32, i32, i32) {
    %c0_i32 = arith.constant 0 : i32
    %c0_i32_0 = arith.constant 0 : i32
    %c0_i32_1 = arith.constant 0 : i32
    return %arg0, %c0_i32, %c0_i32_0 : i32, i32, i32
  }
  func.func @transform_2(%arg0: i32, %arg1: i32) -> (i32, i32, i32) {
    %c0_i32 = arith.constant 0 : i32
    %c0_i32_0 = arith.constant 0 : i32
    %c0_i32_1 = arith.constant 0 : i32
    return %arg0, %c0_i32, %c0_i32_0 : i32, i32, i32
  }
  func.func @transform_3(%arg0: i32, %arg1: i32) -> (i32, i32) {
    %c0_i32 = arith.constant 0 : i32
    %c0_i32_0 = arith.constant 0 : i32
    %c0_i32_1 = arith.constant 0 : i32
    return %c0_i32, %c0_i32_0 : i32, i32
  }
  func.func @transform_4(%arg0: i32, %arg1: i32) -> (i32, i32) {
    %c0_i32 = arith.constant 0 : i32
    %c0_i32_0 = arith.constant 0 : i32
    %c0_i32_1 = arith.constant 0 : i32
    return %c0_i32, %c0_i32_0 : i32, i32
  }
  func.func @transform_5(%arg0: i32, %arg1: i32) -> (i32, i32) {
    %c0_i32 = arith.constant 0 : i32
    %c0_i32_0 = arith.constant 0 : i32
    %c0_i32_1 = arith.constant 0 : i32
    return %c0_i32, %c0_i32_0 : i32, i32
  }
  func.func @transform_6(%arg0: i32, %arg1: i32) -> (i32, i32) {
    %c0_i32 = arith.constant 0 : i32
    %c0_i32_0 = arith.constant 0 : i32
    %c0_i32_1 = arith.constant 0 : i32
    return %c0_i32, %c0_i32_0 : i32, i32
  }
  func.func @transform_7(%arg0: i32, %arg1: i32) -> (i32, i32) {
    %c0_i32 = arith.constant 0 : i32
    %c0_i32_0 = arith.constant 0 : i32
    %c0_i32_1 = arith.constant 0 : i32
    return %c0_i32, %c0_i32_0 : i32, i32
  }
  func.func @transform_8(%arg0: i32, %arg1: i32) -> (i32, i32) {
    %c0_i32 = arith.constant 0 : i32
    %c0_i32_0 = arith.constant 0 : i32
    %c0_i32_1 = arith.constant 0 : i32
    return %c0_i32, %c0_i32_0 : i32, i32
  }
  func.func @transform_9(%arg0: i32, %arg1: i32) -> (i32, i32) {
    %c0_i32 = arith.constant 0 : i32
    %c0_i32_0 = arith.constant 0 : i32
    %c0_i32_1 = arith.constant 0 : i32
    return %c0_i32, %c0_i32_0 : i32, i32
  }
  func.func @transform_10(%arg0: i32, %arg1: i32) -> (i32, i32) {
    %c0_i32 = arith.constant 0 : i32
    %c0_i32_0 = arith.constant 0 : i32
    %c0_i32_1 = arith.constant 0 : i32
    return %c0_i32, %c0_i32_0 : i32, i32
  }
  func.func @transform_11(%arg0: i32, %arg1: i32) -> (i32, i32, i32) {
    %c0_i32 = arith.constant 0 : i32
    %c0_i32_0 = arith.constant 0 : i32
    return %arg0, %arg1, %c0_i32 : i32, i32, i32
  }
}

</mosaic_0001>

<bundles_post_ra>
// kernel: tpu_custom_call.1
= control target key start
LH: loop header
LB: loop body
LE: loop exit
PB: predicated region body
PF: predicated region fallthrough
CT: control target
= control target key end

     0   :  { %s2518_s0 = inlined_call_operand.hbm [shape: f32[2,8,32], index: 0, kind: input, shape index: {}]   ;;  %s2519_s1 = inlined_call_operand.hbm [shape: f32[2,8,32], index: 1, kind: input, shape index: {}]   ;;  %s2520_s2 = inlined_call_operand.hbm [shape: f32[2,8,32], index: 2, kind: input, shape index: {}]   ;;  %s2521_s3 = inlined_call_operand.hbm [shape: bf16[32,32], index: 3, kind: input, shape index: {}]   ;;  %s2522_s4 = inlined_call_operand.hbm [shape: bf16[32,32], index: 4, kind: input, shape index: {}]   ;;  %s2523_s5 = inlined_call_operand.vmem [shape: bf16[32,32], index: 5, kind: input, shape index: {}]   ;;  %s2524_s6 = inlined_call_operand.hbm [shape: bf16[32,32], index: 6, kind: input, shape index: {}]   ;;  %s2525_s7 = inlined_call_operand.vmem [shape: f32[1,32], index: 7, kind: input, shape index: {}]   ;;  %s2526_s8 = inlined_call_operand.vmem [shape: f32[1,32], index: 8, kind: input, shape index: {}]   ;;  %s2527_s9 = inlined_call_operand.vmem [shape: f32[1,32], index: 9, kind: input, shape index: {}]   ;;  %s2528_s10 = inlined_call_operand.vmem [shape: f32[1,32], index: 10, kind: input, shape index: {}]   ;;  %s2529_s11 = inlined_call_operand.hbm [shape: f32[2,8,32], index: 11, kind: output, shape index: {}]  }
   0x1   :  { %2557 = sst [smem:[#allocation27_spill]] %s2519_s1 }
   0x2   :  { %2558 = sst [smem:[#allocation28_spill]] %s2521_s3 }
   0x3   :  { %2559 = sst [smem:[#allocation29_spill]] %s2523_s5 }
   0x4   :  { %2560 = sst [smem:[#allocation30_spill]] %s2525_s7 }
   0x5   :  { %2561 = sst [smem:[#allocation31_spill]] %s2527_s9 }
   0x6   :  { %2562 = sst [smem:[#allocation32_spill]] %s2528_s10 }
   0x7   :  { %2563 = sst [smem:[#allocation33_spill]] %s2529_s11 }
   0x8   :  { %16 = vsyncpa [#allocation3], 0 }
   0x9   :  { %18 = vsyncpa [#allocation3 + $0x1], 0 }
   0xa   :  { %19 = vsyncpa [#allocation6], 0 }
   0xb   :  { %21 = vsyncpa [#allocation6 + $0x1], 0 }
   0xc   :  { %22 = vsyncpa [#allocation9], 0 }
   0xd   :  { %23 = vsyncpa [#allocation12], 0 }
   0xe   :  { %24 = vsyncpa [#allocation4], 0 }
   0xf   :  { %26 = vsyncpa [#allocation4 + $0x1], 0  ;;  %s2079_s17 = smov 0   ;;  %s2081_s18 = smov 0  }
  0x10   :  { %s2083_s19 = smov 0   ;;  %s2085_s20 = smov 0  }
  0x11   :  { %s2087_s21 = smov 0   ;;  %s2089_s22 = smov 0  }
  0x12 LB: > { %2564 = sst [smem:[#allocation19_spill]] %s1980_s17  ;;  %s2110_s23 = sadd.s32 4294967295, %s2000_s22   ;;  %s2000_s22 = sphi %s2089_s22, %s32_s22   ;;  %s1996_s21 = sphi %s2087_s21, %s2612_s21   ;;  %s1992_s20 = sphi %s2085_s20, %s2611_s20   ;;  %s1988_s19 = sphi %s2083_s19, %s2615_s19   ;;  %s1984_s18 = sphi %s2081_s18, %s2614_s18   ;;  %s1980_s17 = sphi %s2079_s17, %s2613_s17  }
  0x13   : > { %2565 = sst [smem:[#allocation20_spill]] %s1992_s20  ;;  %s1439_s24 = sadd.s32 4294967294, %s2000_s22  }
  0x14   : > { %2566 = sst [smem:[#allocation21_spill]] %s1996_s21  ;;  %p66_p0 = scmp.ne.s32.totalorder %s1984_s18, %s1980_s17 }
  0x15   : > { %2567 = sst [smem:[#allocation22_spill]] %s2000_s22  ;;  %p2532_p1 = scmp.eq.s32.totalorder %s2110_s23, 0 }
  0x16   : > { %p318_p3 = scmp.eq.s32.totalorder %s1439_s24, 1  ;;  %p1440_p5 = scmp.ge.s32.totalorder %s2000_s22, 1 }
  0x17   : > { %p2119_p4 = por %p2532_p1, %p66_p0  ;;  %p325_p7 = scmp.lt.s32.totalorder %s2000_s22, 3 }
  0x18   : > { %p2124_p6 = por %p318_p3, %p66_p0  ;;  %s2002_s28 = smov [#allocation8]  }
  0x19   : > { %s2568_s25 = scalar_select %p2119_p4, 1, 0 }
  0x1a   : > { %s2569_s26 = scalar_select %p2124_p6, 1, 0 }
  0x1b   : > { %p2129_p8 = pnand %p1440_p5, %p325_p7  ;;  %s337_s29 = sshll.u32 %s2002_s28, 4  ;;  %s338_s29 = int_to_ptr.vmem [resolvable:$true] %s337_s29 }
  0x1c   : > { %2570 = sst [smem:[#allocation23_spill]] %s2569_s26  ;;  %s44_s12 = sadd.s32 1, %s1996_s21 }
  0x1d   : > { %s2571_s27 = scalar_select %p2129_p8, 1, 0 }
  0x1e   : > { %p1615_p9 = pneg %p2129_p8  ;;  %s2573_s3 = sld [smem:[#allocation28_spill]] }
  0x20   : > { %p2138_p11 = pnand %p1615_p9, %p2532_p1 }
  0x22   : > { %s2572_s30 = scalar_select %p2138_p11, 1, 0 }
  0x23   : > { %p2151_p13 = pneg %p2138_p11 }
  0x24   : > { %s1732_s15 = scalar_lea.hbm %s2573_s3, 256 }
  0x25   : > { %p1733_p12 = scmp.ne.s32.totalorder %s2573_s3, %s1732_s15  ;;  %p1739_p5 = scmp.lt.u32.totalorder %s1732_s15, %s2573_s3 }
  0x26   : > { %s2574_s28 = scalar_select %p2151_p13, 1, 0 }
  0x27   : > { %p1735_p0 = pnand %p2151_p13, %p1733_p12 }
  0x29   : > { %p1736_p3 = pneg %p1735_p0 }
  0x2b   : > { %p1741_p7 = pnand %p1739_p5, %p1736_p3 }
  0x2d   : > { %1744 = shalt.err (!%p1741_p7)
}
  0x2e   : > { %s1745_s13 = scalar_lea.vmem %s338_s29, 256  ;;  %p1753_p2 = scmp.lt.s32.totalorder %s338_s29, %s338_s29 }
  0x2f   : > { %p1746_p9 = scmp.ne.s32.totalorder %s338_s29, %s1745_s13  ;;  %p1754_p6 = scmp.lt.s32.totalorder %s1745_s13, %s1745_s13 }
  0x31   : > { %p1748_p10 = pnand %p1746_p9, %p2151_p13  ;;  %p1755_p4 = por %p1754_p6, %p1753_p2 }
  0x33   : > { %p1749_p1 = pneg %p1748_p10 }
  0x35   : > { %p1756_p8 = pnand %p1755_p4, %p1749_p1 }
  0x37   : > { %1759 = shalt.err (!%p1756_p8)
}
  0x38   : > { %s2536_s14 = smov 64   ;;  %s2538_s17 = smov 4  }
  0x39   : > { %1618 = dma.hbm_to_vmem [thread:$0]  (!%p2138_p11), %s2573_s3, 256, %s338_s29, [#allocation9], %s2536_s14, %s2536_s14, %s2538_s17  }
  0x3a   : > { %p46_p1 = scmp.ge.s32.totalorder %s44_s12, 2  ;;  %s53_s16 = sadd.s32 1, %s1988_s19 }
  0x3b   : > { %p60_p2 = scmp.ne.s32.totalorder %s1988_s19, %s1984_s18  ;;  %p61_p4 = scmp.eq.s32.totalorder %s2000_s22, 0 }
  0x3c   : > { %s2617_s12 = smov (%p46_p1, %s44_s12), 0  ;;  %p2576_p8 = scmp.eq.s32.totalorder %s2110_s23, 1 }
  0x3d   : > { %2575 = sst [smem:[#allocation24_spill]] %s2617_s12  ;;  %p62_p6 = por %p61_p4, %p60_p2 }
  0x3e   : > { %p2178_p10 = por %p2576_p8, %p60_p2  ;;  %s48_s13 = ssub.s32 %s1996_s21, %s2617_s12 }
  0x3f   : > { %p1642_p12 = scmp.lt.s32.totalorder %s2000_s22, 2  ;;  %p51_p0 = scmp.eq.s32.totalorder %s48_s13, 0 }
  0x40   : > { %s2577_s24 = scalar_select %p2178_p10, 1, 0 }
  0x41   : > { %s2541_s11 = sand.u32 1, %s1988_s19   ;;  %s2191_s26 = sshll.u32 %s1996_s21, 7 }
  0x42   : > { %2578 = sst [smem:[#allocation25_spill]] %s2577_s24  ;;  %s2188_s29 = sshll.u32 %s2541_s11, 3 }
  0x43   : > { %s2194_s15 = scalar_select %p51_p0, %s1988_s19, %s53_s16  }
  0x44   : > { %p2196_p3 = pnand %p1642_p12, %p62_p6  ;;  %s411_s17 = sand.u32 1, %s2000_s22  }
  0x45   : > { %2579 = sst [smem:[#allocation26_spill]] %s2194_s15  ;;  %s2581_s1 = sld [smem:[#allocation27_spill]] }
  0x46   : > { %s2580_s14 = scalar_select %p2196_p3, 1, 0 }
  0x47   : > { %s415_s11 = scalar_lea.vmem [#allocation5], %s2188_s29  ;;  %s2005_s16 = smov [#allocation10]  }
  0x48   : > { %s422_s21 = sshll.u32 %s415_s11, 4  ;;  %s2210_s15 = sshll.u32 %s2005_s16, 4  ;;  %s2208_s21 = int_to_ptr.vmem [resolvable:$true] %s422_s21  ;;  %s351_s15 = int_to_ptr.vmem [resolvable:$true] %s2210_s15 }
  0x49   : > { %s2212_s24 = scalar_lea.sflag [#allocation6], %s411_s17  ;;  %p2218_p7 = pneg %p2196_p3 }
  0x4b   : > { %s2205_s13 = scalar_lea.hbm %s2581_s1, %s2191_s26  ;;  %s1765_s22 = scalar_lea.hbm %s2581_s1, 256 }
  0x4c   : > { %s1760_s10 = scalar_lea.hbm %s2205_s13, 128  ;;  %p1766_p2 = scmp.lt.u32.totalorder %s2205_s13, %s2581_s1 }
  0x4d   : > { %p1761_p5 = scmp.ne.s32.totalorder %s2205_s13, %s1760_s10  ;;  %p1767_p4 = scmp.lt.u32.totalorder %s1765_s22, %s1760_s10 }
  0x4e   : > { %s2582_s3 = scalar_select %p2218_p7, 1, 0 }
  0x4f   : > { %p1763_p9 = pnand %p2218_p7, %p1761_p5  ;;  %p1768_p6 = por %p1767_p4, %p1766_p2 }
  0x50   : > { %p1769_p8 = scmp.lt.u32.totalorder %s1760_s10, %s2205_s13 }
  0x51   : > { %p1764_p1 = pneg %p1763_p9 }
  0x52   : > { %p1770_p12 = por %p1769_p8, %p1768_p6 }
  0x54   : > { %p1771_p0 = pnand %p1770_p12, %p1764_p1 }
  0x56   : > { %1774 = shalt.err (!%p1771_p0)
}
  0x57   : > { %s1775_s17 = scalar_lea.vmem %s2208_s21, 128  ;;  %s2006_s12 = smov [#allocation5]  }
  0x58   : > { %p1776_p5 = scmp.ne.s32.totalorder %s2208_s21, %s1775_s17  ;;  %s1780_s11 = sshll.u32 %s2006_s12, 4  ;;  %s1781_s11 = int_to_ptr.vmem [resolvable:$false] %s1780_s11 }
  0x59   : > { %s1782_s20 = scalar_lea.vmem %s1781_s11, 256  ;;  %p1783_p11 = scmp.lt.s32.totalorder %s2208_s21, %s1781_s11 }
  0x5a   : > { %p1778_p9 = pnand %p1776_p5, %p2218_p7  ;;  %p1784_p13 = scmp.lt.s32.totalorder %s1782_s20, %s1775_s17 }
  0x5c   : > { %p1779_p10 = pneg %p1778_p9  ;;  %p1785_p2 = por %p1784_p13, %p1783_p11 }
  0x5e   : > { %p1786_p4 = pnand %p1785_p2, %p1779_p10 }
  0x60   : > { %1789 = shalt.err (!%p1786_p4)
}
  0x61   : > { %1631 = dma.hbm_to_vmem [thread:$0]  (!%p2196_p3), %s2205_s13, 128, %s2208_s21, %s2212_s24  }
  0x62   : > { %s1790_s16 = scalar_lea.hbm %s2522_s4, 256  ;;  %p2583_p11 = scmp.ne.s32.totalorder %s2574_s28, 0 }
  0x63   : > { %p1791_p1 = scmp.ne.s32.totalorder %s2522_s4, %s1790_s16  ;;  %p1797_p6 = scmp.lt.u32.totalorder %s1790_s16, %s2522_s4 }
  0x65   : > { %p1793_p13 = pnand %p1791_p1, %p2583_p11 }
  0x67   : > { %p1794_p10 = pneg %p1793_p13 }
  0x69   : > { %p1799_p8 = pnand %p1797_p6, %p1794_p10 }
  0x6b   : > { %1802 = shalt.err (!%p1799_p8)
}
  0x6c   : > { %s1803_s20 = scalar_lea.vmem %s351_s15, 256  ;;  %p1811_p9 = scmp.lt.s32.totalorder %s351_s15, %s351_s15 }
  0x6d   : > { %p1804_p12 = scmp.ne.s32.totalorder %s351_s15, %s1803_s20  ;;  %p1812_p2 = scmp.lt.s32.totalorder %s1803_s20, %s1803_s20 }
  0x6f   : > { %p1806_p0 = pnand %p1804_p12, %p2583_p11  ;;  %p1813_p4 = por %p1812_p2, %p1811_p9 }
  0x71   : > { %p1807_p5 = pneg %p1806_p0 }
  0x73   : > { %p1814_p3 = pnand %p1813_p4, %p1807_p5 }
  0x75   : > { %1817 = shalt.err (!%p1814_p3)
}
  0x76   : > { %p2584_p1 = scmp.ne.s32.totalorder %s2572_s30, 0  ;;  %s2585_s1 = smov 4  }
  0x77   : > { %s2586_s21 = smov 64   ;;  %s2007_s22 = smov [#allocation11]  }
  0x78   : > { %1621 = dma.hbm_to_vmem [thread:$0]  (!%p2584_p1), %s2522_s4, 256, %s351_s15, [#allocation9], %s2586_s21, %s2586_s21, %s2585_s1  }
  0x79   : > { %s366_s16 = sshll.u32 %s2007_s22, 4  ;;  %s1818_s11 = scalar_lea.hbm %s2524_s6, 256  ;;  %s367_s16 = int_to_ptr.vmem [resolvable:$true] %s366_s16 }
  0x7a   : > { %p1819_p3 = scmp.ne.s32.totalorder %s2524_s6, %s1818_s11  ;;  %p1825_p6 = scmp.lt.u32.totalorder %s1818_s11, %s2524_s6 }
  0x7c   : > { %p1821_p13 = pnand %p1819_p3, %p2583_p11 }
  0x7e   : > { %p1822_p10 = pneg %p1821_p13 }
  0x80   : > { %p1827_p8 = pnand %p1825_p6, %p1822_p10 }
  0x82   : > { %1830 = shalt.err (!%p1827_p8)
}
  0x83   : > { %s1831_s15 = scalar_lea.vmem %s367_s16, 256  ;;  %p1839_p9 = scmp.lt.s32.totalorder %s367_s16, %s367_s16 }
  0x84   : > { %p1832_p12 = scmp.ne.s32.totalorder %s367_s16, %s1831_s15  ;;  %p1840_p2 = scmp.lt.s32.totalorder %s1831_s15, %s1831_s15 }
  0x86   : > { %p1834_p0 = pnand %p1832_p12, %p2583_p11  ;;  %p1841_p4 = por %p1840_p2, %p1839_p9 }
  0x88   : > { %p1835_p5 = pneg %p1834_p0 }
  0x8a   : > { %p1842_p7 = pnand %p1841_p4, %p1835_p5 }
  0x8c   : > { %1845 = shalt.err (!%p1842_p7)
}
  0x8d   : > { %1624 = dma.hbm_to_vmem [thread:$0]  (!%p2584_p1), %s2524_s6, 256, %s367_s16, [#allocation12], %s2586_s21, %s2586_s21, %s2585_s1  }
  0x8e   : > { %s2289_s13 = scalar_lea.hbm %s2518_s0, %s2191_s26  ;;  %s396_s30 = scalar_lea.vmem [#allocation2], %s2188_s29 }
  0x8f   : > { %s404_s10 = sshll.u32 %s396_s30, 4  ;;  %s2587_s22 = sand.u32 1, %s1988_s19   ;;  %s405_s10 = int_to_ptr.vmem [resolvable:$true] %s404_s10 }
  0x90   : > { %s393_s12 = scalar_lea.sflag [#allocation3], %s2587_s22  ;;  %s1846_s17 = scalar_lea.hbm %s2289_s13, 128 }
  0x91   : > { %p1847_p7 = scmp.ne.s32.totalorder %s2289_s13, %s1846_s17  ;;  %p2588_p11 = scmp.ne.s32.totalorder %s2582_s3, 0 }
  0x92   : > { %s1851_s16 = scalar_lea.hbm %s2518_s0, 256  ;;  %p1852_p1 = scmp.lt.u32.totalorder %s2289_s13, %s2518_s0 }
  0x93   : > { %p1849_p3 = pnand %p1847_p7, %p2588_p11  ;;  %p1853_p10 = scmp.lt.u32.totalorder %s1851_s16, %s1846_s17 }
  0x94   : > { %p1855_p8 = scmp.lt.u32.totalorder %s1846_s17, %s2289_s13 }
  0x95   : > { %p1850_p13 = pneg %p1849_p3  ;;  %p1854_p6 = por %p1853_p10, %p1852_p1 }
  0x97   : > { %p1856_p12 = por %p1855_p8, %p1854_p6 }
  0x99   : > { %p1857_p0 = pnand %p1856_p12, %p1850_p13 }
  0x9b   : > { %1860 = shalt.err (!%p1857_p0)
}
  0x9c   : > { %s1861_s15 = scalar_lea.vmem %s405_s10, 128  ;;  %s2008_s5 = smov [#allocation2]  }
  0x9d   : > { %p1862_p5 = scmp.ne.s32.totalorder %s405_s10, %s1861_s15  ;;  %s1866_s7 = sshll.u32 %s2008_s5, 4  ;;  %s1867_s7 = int_to_ptr.vmem [resolvable:$false] %s1866_s7 }
  0x9e   : > { %s1868_s9 = scalar_lea.vmem %s1867_s7, 256  ;;  %p1869_p4 = scmp.lt.s32.totalorder %s405_s10, %s1867_s7 }
  0x9f   : > { %p1864_p9 = pnand %p1862_p5, %p2588_p11  ;;  %p1870_p7 = scmp.lt.s32.totalorder %s1868_s9, %s1861_s15 }
  0xa1   : > { %p1865_p2 = pneg %p1864_p9  ;;  %p1871_p3 = por %p1870_p7, %p1869_p4 }
  0xa3   : > { %p1872_p1 = pnand %p1871_p3, %p1865_p2 }
  0xa5   : > { %1875 = shalt.err (!%p1872_p1)
}
  0xa6   : > { %p2589_p10 = scmp.ne.s32.totalorder %s2580_s14, 0  ;;  %s2315_s22 = scalar_lea.hbm %s2520_s2, %s2191_s26 }
  0xa7   : > { %s433_s17 = scalar_lea.vmem [#allocation7], %s2188_s29  ;;  %s1876_s21 = scalar_lea.hbm %s2315_s22, 128 }
  0xa8   : > { %1628 = dma.hbm_to_vmem [thread:$0]  (!%p2589_p10), %s2289_s13, 128, %s405_s10, %s393_s12  }
  0xa9   : > { %s440_s1 = sshll.u32 %s433_s17, 4  ;;  %p1877_p13 = scmp.ne.s32.totalorder %s2315_s22, %s1876_s21  ;;  %s441_s1 = int_to_ptr.vmem [resolvable:$true] %s440_s1 }
  0xaa   : > { %s1881_s13 = scalar_lea.hbm %s2520_s2, 256  ;;  %p1882_p12 = scmp.lt.u32.totalorder %s2315_s22, %s2520_s2 }
  0xab   : > { %p1879_p6 = pnand %p1877_p13, %p2588_p11  ;;  %p1883_p0 = scmp.lt.u32.totalorder %s1881_s13, %s1876_s21 }
  0xac   : > { %p1885_p9 = scmp.lt.u32.totalorder %s1876_s21, %s2315_s22 }
  0xad   : > { %p1880_p8 = pneg %p1879_p6  ;;  %p1884_p5 = por %p1883_p0, %p1882_p12 }
  0xaf   : > { %p1886_p2 = por %p1885_p9, %p1884_p5 }
  0xb1   : > { %p1887_p4 = pnand %p1886_p2, %p1880_p8 }
  0xb3   : > { %1890 = shalt.err (!%p1887_p4)
}
  0xb4   : > { %s1891_s29 = scalar_lea.vmem %s441_s1, 128  ;;  %s2009_s26 = smov [#allocation7]  }
  0xb5   : > { %p1892_p7 = scmp.ne.s32.totalorder %s441_s1, %s1891_s29  ;;  %s1896_s20 = sshll.u32 %s2009_s26, 4  ;;  %s1897_s20 = int_to_ptr.vmem [resolvable:$false] %s1896_s20 }
  0xb6   : > { %s1898_s15 = scalar_lea.vmem %s1897_s20, 256  ;;  %p1899_p13 = scmp.lt.s32.totalorder %s441_s1, %s1897_s20 }
  0xb7   : > { %p1894_p3 = pnand %p1892_p7, %p2588_p11  ;;  %p1900_p6 = scmp.lt.s32.totalorder %s1898_s15, %s1891_s29 }
  0xb9   : > { %p1895_p1 = pneg %p1894_p3  ;;  %p1901_p10 = por %p1900_p6, %p1899_p13 }
  0xbb   : > { %p1902_p0 = pnand %p1901_p10, %p1895_p1 }
  0xbd   : > { %1905 = shalt.err (!%p1902_p0)
}
  0xbe   : > { %p2590_p12 = scmp.ne.s32.totalorder %s2580_s14, 0  ;;  %p2591_p8 = scmp.ne.s32.totalorder %s2571_s27, 0 }
  0xbf   : > { %s2339_s3 = sand.u32 (!%p2591_p8), 1, %s1984_s18   ;;  %p2592_p11 = scmp.ne.s32.totalorder (!%p2591_p8), %s2568_s25, 0 }
  0xc0   : > { %1634 = dma.hbm_to_vmem [thread:$0]  (!%p2590_p12), %s2315_s22, 128, %s441_s1, %s2212_s24  }
  0xc1   : > { %449 = sbr.rel (%p2591_p8) target bundleno = 1665 (0x681), region = 64  ;;  %s2342_s5 = sshll.u32 (!%p2591_p8), %s2339_s3, 3 }
  0xc2   : > { %s452_s7 = scalar_lea.sflag (!%p2591_p8), [#allocation3], %s2339_s3  ;;  %s455_s9 = scalar_lea.vmem (!%p2591_p8), [#allocation2], %s2342_s5 }
  0xc8   : > { %1959 = dma.done.wait (%p2592_p11), %s452_s7, 128  }
  0xc9   : > { %1961 = vsyncadd (%p2592_p11), %s452_s7, 4294967168  ;;  %s460_s27 = sand.u32 1, %s2110_s23   ;;  %s464_s24 = scalar_lea.vmem [#allocation5], %s2342_s5 }
  0xca   : > { %s461_s14 = scalar_lea.sflag [#allocation6], %s460_s27 }
  0xcb   : > { %1963 = dma.done.wait (%p2592_p11), %s461_s14, 256  }
  0xcc   : > { %1965 = vsyncadd (%p2592_p11), %s461_s14, 4294967040  ;;  %s473_s28 = scalar_lea.vmem [#allocation7], %s2342_s5  ;;  %p2593_p10 = scmp.eq.s32.totalorder %s2110_s23, 0 }
  0xce   : > { %1967 = dma.done.wait (%p2593_p10), [#allocation9], 512   ;;  %p2594_p5 = pmov %p2593_p10 }
  0xd0   : > { %1969 = vsyncadd (%p2594_p5), [#allocation9], 4294966784  ;;  %p2595_p9 = pmov %p2594_p5 }
  0xd1   : > { %p2596_p2 = pmov %p2594_p5 }
  0xd2   : > { %1971 = dma.done.wait (%p2595_p9), [#allocation12], 256  }
  0xd3   : > { %1973 = vsyncadd (%p2596_p2), [#allocation12], 4294967040  ;;  %v2010_v0 = vmov 0.0   ;;  %vm2011_vm0 = vmmov 0   ;;  %v1708_v1 = vld [vmem:[#allocation10] sm:$0xff]   ;;  %v1709_v2 = vld [vmem:[#allocation8] sm:$0xff]  }
  0xd4   : > { %1523 = vmatprep.subr.bf16.mxu1 %v2010_v0  ;;  %1515 = vmatprep.subr.bf16.mxu0 %v2010_v0  ;;  %v1710_v3 = vld [vmem:[#allocation10 + $0x8] sm:$0xff]   ;;  %v537_v4 = vld [vmem:[%s464_s24] sm:$0xff]  ;;  %vm564_vm1 = vcmask 261120   ;;  %v1463_v9 = vld [vmem:[%s2526_s8] ss:$0 sm:$0xff]  ;;  %s2597_s17 = sld [smem:[#allocation30_spill]] }
  0xd5   : > { %1527 = vmatprep.mubr.msk.bf16.mxu1 %vm2011_vm0, %v2010_v0  ;;  %1519 = vmatprep.mubr.msk.bf16.mxu0 %vm2011_vm0, %v2010_v0  ;;  %v1711_v5 = vld [vmem:[#allocation8 + $0x8] sm:$0xff]   ;;  %v535_v6 = vld [vmem:[%s455_s9] sm:$0xff]  ;;  %v538_v7 = vpack.c.bf16 %v537_v4, %v537_v4  ;;  %vm743_vm2 = vcmask 64512   ;;  %s2012_s1 = smov 112   ;;  %s2013_s21 = smov 120   ;;  %vm806_vm3 = vcmask 1043456  }
  0xd6   : > { %1524 = vmatpush3.bf16.msra.mxu1 %v1708_v1  ;;  %1516 = vmatpush3.bf16.msra.mxu0 %v1709_v2  ;;  %v536_v8 = vpack.c.bf16 %v535_v6, %v535_v6  ;;  %s2014_s16 = smov 104   ;;  %s2598_s10 = sld [smem:[#allocation29_spill]]  ;;  %v539_v26 = vld [vmem:[%s473_s28] sm:$0xff]  ;;  %vm1199_vm4 = vcmask 130048   ;;  %vm1201_vm5 = vcmask 195584  }
  0xd7   : > { %1525 = vmatprep.subr.bf16.mxu1 %v2010_v0  ;;  %1517 = vmatprep.subr.bf16.mxu0 %v2010_v0  ;;  %v540_v27 = vpack.c.bf16 %v539_v26, %v539_v26  ;;  %s2599_s15 = sld [smem:[#allocation31_spill]]  ;;  %s2015_s7 = smov 8  }
  0xd8   : > { %s2016_s9 = smov 16   ;;  %s2017_s27 = smov 24  }
  0xd9   : > { %s2600_s14 = sld [smem:[#allocation20_spill]]  ;;  %s2601_s23 = sld [smem:[#allocation32_spill]] }
  0xda   : > { %1526 = vmatpush3.bf16.msra.mxu1 %v1710_v3  ;;  %1518 = vmatpush3.bf16.msra.mxu0 %v1711_v5  ;;  %v1459_v10 = vld [vmem:[%s2597_s17] ss:$0 sm:$0xff]  ;;  %s2602_s25 = sld [smem:[#allocation25_spill]]  ;;  %s533_s22 = scalar_lea.vmem [#allocation13], %s2342_s5 }
  0xdb   : > { %1539 = vmatprep.subr.bf16.mxu1 %v2010_v0  ;;  %1531 = vmatprep.subr.bf16.mxu0 %v2010_v0  ;;  %s1286_s17 = sshll.u32 %s533_s22, 4  ;;  %s1272_s13 = scalar_lea.sflag [#allocation4], %s2339_s3  ;;  %s2470_s17 = int_to_ptr.vmem [resolvable:$true] %s1286_s17 }
  0xdc   : > { %v1712_v24 = vld [vmem:[%s2598_s10] sm:$0xff]   ;;  %v1713_v25 = vld [vmem:[%s2598_s10 + $0x8] sm:$0xff]   ;;  %s1906_s5 = scalar_lea.vmem %s2470_s17, 128  ;;  %s2018_s12 = smov [#allocation13]  }
  0xdd   : > { %1528 = vmatmul.mubr.msk.bf16.vlgmr.msra.gmra.mrb[0].mxu1 %vm564_vm1, %v538_v7  ;;  %1520 = vmatmul.mubr.msk.bf16.vlgmr.msra.gmra.mrb[0].mxu0 %vm564_vm1, %v536_v8  ;;  %v1467_v43 = vld [vmem:[%s2599_s15] ss:$0 sm:$0xff]  ;;  %p1907_p4 = scmp.ne.s32.totalorder %s2470_s17, %s1906_s5  ;;  %s1910_s29 = sshll.u32 %s2018_s12, 4  ;;  %s1911_s29 = int_to_ptr.vmem [resolvable:$false] %s1910_s29 }
  0xde   : > { %1541 = vmatprep.mubr.msk.bf16.mxu1 %vm2011_vm0, %v2010_v0  ;;  %1535 = vmatprep.mubr.msk.bf16.mxu0 %vm2011_vm0, %v2010_v0  ;;  %s1912_s26 = scalar_lea.vmem %s1911_s29, 256  ;;  %p1913_p13 = scmp.lt.s32.totalorder %s2470_s17, %s1911_s29 }
  0xdf   : > { %1532 = vmatpush3.bf16.msra.mxu0 %v1712_v24  ;;  %s1484_s30 = sshll.u32 %s2600_s14, 7  ;;  %p1914_p6 = scmp.lt.s32.totalorder %s1912_s26, %s1906_s5 }
  0xe0   : > { %1533 = vmatprep.subr.bf16.mxu0 %v2010_v0  ;;  %p2604_p7 = scmp.ne.s32.totalorder %s2602_s25, 0 }
  0xe1   : > { %p1915_p0 = por %p1914_p6, %p1913_p13 }
  0xe2   : > { %p1908_p3 = pnand %p1907_p4, %p2604_p7 }
  0xe3   : > { %1534 = vmatpush3.bf16.msra.mxu0 %v1713_v25 }
  0xe4   : > { %1545 = vmatprep.subr.bf16.mxu0 %v2010_v0  ;;  %p1909_p1 = pneg %p1908_p3 }
  0xe6   : > { %1536 = vmatmul.mubr.msk.bf16.vlgmr.msra.gmra.mrb[4].mxu0 %vm564_vm1, %v540_v27  ;;  %p1916_p12 = pnand %p1915_p0, %p1909_p1 }
  0xe7   : > { %1547 = vmatprep.mubr.msk.bf16.mxu0 %vm2011_vm0, %v2010_v0 }
 0x1b0   : > { %v668_v11 = vpop.f32.mrb[0].mxu1  ;;  %v602_v14 = vpop.f32.mrb[0].mxu0 }
 0x1b1   : > { %v669_v12 = vadd.f32 %v1463_v9, %v668_v11  ;;  %v1529_v13 = vpop.f32.mrb[1].mxu1  ;;  %v603_v16 = vadd.f32 %v1459_v10, %v602_v14  ;;  %v1521_v17 = vpop.f32.mrb[1].mxu0 }
 0x1b2   : > { %v671_v15 = vpop.f32.mrb[2].mxu1  ;;  %v605_v20 = vpop.f32.mrb[2].mxu0 }
 0x1b3   : > { %v741_v18 = vpack.c.bf16 %v669_v12, %v669_v12  ;;  %v1530_v19 = vpop.f32.mrb[3].mxu1  ;;  %v1522_v21 = vpop.f32.mrb[3].mxu0  ;;  %v740_v22 = vpack.c.bf16 %v603_v16, %v603_v16 }
 0x1b5   : > { %966 = vrot.lane.b32.xlu1 %v741_v18, %s2012_s1  ;;  %854 = vrot.lane.b32.xlu0 %v741_v18, %s2013_s21  ;;  %v748_v23 = vsel %vm743_vm2, %v741_v18, 0 }
 0x1b6   : > { %1540 = vmatpush3.bf16.xpose.msra.mxu1 %v748_v23 }
 0x1b7   : > { %1551 = vmatprep.subr.bf16.mxu1 %v2010_v0 }
 0x1b9   : > { %964 = vrot.lane.b32.xlu1 %v740_v22, %s2012_s1  ;;  %851 = vrot.lane.b32.xlu0 %v740_v22, %s2013_s21  ;;  %v734_v44 = vpop.f32.mrb[4].mxu0 }
 0x1ba   : > { %v735_v45 = vadd.f32 %v1467_v43, %v734_v44  ;;  %v1537_v46 = vpop.f32.mrb[5].mxu0 }
 0x1bb   : > { %v737_v47 = vpop.f32.mrb[6].mxu0 }
 0x1bc   : > { %v742_v48 = vpack.c.bf16 %v735_v45, %v735_v45  ;;  %v1538_v49 = vpop.f32.mrb[7].mxu0 }
 0x1bd   : > { %1075 = vrot.lane.b32.xlu1 %v740_v22, %s2014_s16  ;;  %1077 = vrot.lane.b32.xlu0 %v741_v18, %s2014_s16 }
 0x1be   : > { %1542 = vmatmul.mubr.msk.bf16.vlgmr.msra.gmra.mrb[4].mxu1 %vm743_vm2, %v740_v22  ;;  %v808_v50 = vsel %vm806_vm3, %v742_v48, 0 }
 0x1bf   : > { %1553 = vmatprep.mubr.msk.bf16.mxu1 %vm2011_vm0, %v2010_v0  ;;  %1546 = vmatpush3.bf16.msra.mxu0 %v808_v50 }
 0x1c0   : > { %1557 = vmatprep.subr.bf16.mxu0 %v2010_v0 }
 0x227   : > { %v855_v28 = vpop.permute.xlu0 %854  ;;  %v967_v30 = vpop.permute.xlu1 %966 }
 0x228   : > { %v860_v29 = vsel %vm743_vm2, %v855_v28, 0  ;;  %v972_v32 = vsel %vm743_vm2, %v967_v30, 0 }
 0x229   : > { %1552 = vmatpush3.bf16.xpose.msra.mxu1 %v860_v29 }
 0x22a   : > { %1563 = vmatprep.subr.bf16.mxu1 %v2010_v0 }
 0x22b   : > { %v852_v31 = vpop.permute.xlu0 %851  ;;  %v965_v34 = vpop.permute.xlu1 %964 }
 0x22f   : > { %v1078_v33 = vpop.permute.xlu0 %1077  ;;  %v1076_v36 = vpop.permute.xlu1 %1075 }
 0x230   : > { %1554 = vmatmul.mubr.msk.bf16.vlgmr.msra.gmra.mrb[8].mxu1 %vm743_vm2, %v852_v31  ;;  %v1083_v35 = vsel %vm743_vm2, %v1078_v33, 0 }
 0x231   : > { %1564 = vmatpush3.bf16.xpose.msra.mxu1 %v972_v32  ;;  %1565 = vmatprep.mubr.msk.bf16.mxu1 %vm2011_vm0, %v2010_v0 }
 0x232   : > { %1575 = vmatprep.subr.bf16.mxu1 %v2010_v0 }
 0x238   : > { %1566 = vmatmul.mubr.msk.bf16.vlgmr.msra.gmra.mrb[12].mxu1 %vm743_vm2, %v965_v34 }
 0x239   : > { %1576 = vmatpush3.bf16.xpose.msra.mxu1 %v1083_v35  ;;  %1577 = vmatprep.mubr.msk.bf16.mxu1 %vm2011_vm0, %v2010_v0 }
 0x23a   : > { %1587 = vmatprep.subr.bf16.mxu1 %v2010_v0 }
 0x240   : > { %1578 = vmatmul.mubr.msk.bf16.vlgmr.msra.gmra.mrb[16].mxu1 %vm743_vm2, %v1076_v36 }
 0x241   : > { %1591 = vmatprep.mubr.msk.bf16.mxu1 %vm2011_vm0, %v2010_v0 }
 0x291   : > { %v784_v37 = vpop.f32.mrb[4].mxu1 }
 0x292   : > { %v790_v38 = vmul.f32 0.35355338, %v784_v37  ;;  %v1543_v39 = vpop.f32.mrb[5].mxu1 }
 0x293   : > { %v787_v40 = vpop.f32.mrb[6].mxu1 }
 0x294   : > { %v1544_v41 = vpop.f32.mrb[7].mxu1  ;;  %v791_v42 = vsel %vm743_vm2, %v790_v38, -inf }
 0x295   : > { %792 = vmax.xlane.f32.xlu0 %v791_v42 }
 0x303   : > { %v896_v51 = vpop.f32.mrb[8].mxu1 }
 0x304   : > { %v902_v52 = vmul.f32 0.35355338, %v896_v51  ;;  %v1555_v53 = vpop.f32.mrb[9].mxu1 }
 0x305   : > { %v899_v54 = vpop.f32.mrb[10].mxu1 }
 0x306   : > { %v1556_v55 = vpop.f32.mrb[11].mxu1  ;;  %v903_v56 = vsel %vm743_vm2, %v902_v52, -inf }
 0x307   : > { %904 = vmax.xlane.f32.xlu1 %v903_v56 }
 0x30b   : > { %v1008_v57 = vpop.f32.mrb[12].mxu1 }
 0x30c   : > { %v1014_v58 = vmul.f32 0.35355338, %v1008_v57  ;;  %v1567_v59 = vpop.f32.mrb[13].mxu1  ;;  %v1715_v57 = vld [vmem:[#allocation11 + $0x8] sm:$0xff]  }
 0x30d   : > { %v1011_v60 = vpop.f32.mrb[14].mxu1 }
 0x30e   : > { %v1568_v61 = vpop.f32.mrb[15].mxu1  ;;  %v1015_v62 = vsel %vm743_vm2, %v1014_v58, -inf }
 0x30f   : > { %1016 = vmax.xlane.f32.xlu0 %v1015_v62 }
 0x313   : > { %v1119_v63 = vpop.f32.mrb[16].mxu1 }
 0x314   : > { %v1125_v1 = vmul.f32 0.35355338, %v1119_v63  ;;  %v1579_v2 = vpop.f32.mrb[17].mxu1 }
 0x315   : > { %v1122_v3 = vpop.f32.mrb[18].mxu1 }
 0x316   : > { %v1580_v4 = vpop.f32.mrb[19].mxu1  ;;  %v1126_v5 = vsel %vm743_vm2, %v1125_v1, -inf }
 0x317   : > { %1127 = vmax.xlane.f32.xlu0 %v1126_v5 }
 0x322   : > { %v793_v6 = vpop.xlane.xlu0 %792 }
 0x323   : > { %v794_v7 = vsub.f32 %v790_v38, %v793_v6 }
 0x325   : > { %v795_v8 = vmul.f32 1.442695, %v794_v7 }
 0x327   : > { %1716 = vpow2.f32 %v795_v8 }
 0x331   : > { %v1717_v9 = vpop.eup %1716 }
 0x332   : > { %v797_v10 = vsel %vm743_vm2, %v1717_v9, 0.0 }
 0x333   : > { %798 = vadd.xlane.f32.xlu1 %v797_v10 }
 0x344   : > { %916 = vrot.lane.b32.xlu1 %v742_v48, %s2013_s21 }
 0x394   : > { %v905_v11 = vpop.xlane.xlu1 %904 }
 0x395   : > { %v906_v12 = vsub.f32 %v902_v52, %v905_v11  ;;  %v1714_v52 = vld [vmem:[#allocation11] sm:$0xff]  }
 0x396   : > { %1588 = vmatpush3.bf16.msra.mxu1 %v1714_v52 }
 0x397   : > { %v907_v13 = vmul.f32 1.442695, %v906_v12  ;;  %1589 = vmatprep.subr.bf16.mxu1 %v2010_v0 }
 0x399   : > { %1718 = vpow2.f32 %v907_v13 }
 0x39a   : > { %1590 = vmatpush3.bf16.msra.mxu1 %v1715_v57 }
 0x39c   : > { %v1017_v14 = vpop.xlane.xlu0 %1016 }
 0x39d   : > { %v1018_v15 = vsub.f32 %v1014_v58, %v1017_v14 }
 0x39f   : > { %v1019_v16 = vmul.f32 1.442695, %v1018_v15 }
 0x3a1   : > { %1720 = vpow2.f32 %v1019_v16 }
 0x3a3   : > { %v1719_v17 = vpop.eup %1718 }
 0x3a4   : > { %v1128_v18 = vpop.xlane.xlu0 %1127  ;;  %v909_v19 = vsel %vm743_vm2, %v1719_v17, 0.0 }
 0x3a5   : > { %v1129_v20 = vsub.f32 %v1125_v1, %v1128_v18  ;;  %910 = vadd.xlane.f32.xlu0 %v909_v19 }
 0x3a7   : > { %v1130_v21 = vmul.f32 1.442695, %v1129_v20 }
 0x3a9   : > { %1722 = vpow2.f32 %v1130_v21 }
 0x3ab   : > { %v1721_v22 = vpop.eup %1720 }
 0x3ac   : > { %v1021_v23 = vsel %vm743_vm2, %v1721_v22, 0.0 }
 0x3ad   : > { %1022 = vadd.xlane.f32.xlu1 %v1021_v23 }
 0x3b3   : > { %v1723_v24 = vpop.eup %1722 }
 0x3b4   : > { %v1132_v25 = vsel %vm743_vm2, %v1723_v24, 0.0 }
 0x3b5   : > { %1133 = vadd.xlane.f32.xlu0 %v1132_v25 }
 0x3be   : > { %1138 = vrot.lane.b32.xlu1 %v742_v48, %s2014_s16  ;;  %s2603_s16 = sld [smem:[#allocation33_spill]] }
 0x3c0   : > { %v799_v26 = vpop.xlane.xlu1 %798 }
 0x3c1   : > { %1724 = vrcp.f32 %v799_v26 }
 0x3c4   : > { %v917_v28 = vpop.permute.xlu1 %916  ;;  %s2468_s11 = scalar_lea.hbm %s2603_s16, %s1484_s30 }
 0x3c5   : > { %v922_v31 = vsel %vm806_vm3, %v917_v28, 0 }
 0x3cb   : > { %v1725_v27 = vpop.eup %1724  ;;  %1027 = vrot.lane.b32.xlu0 %v742_v48, %s2012_s1 }
 0x3cc   : > { %v801_v29 = vmul.f32 %v1725_v27, %v1717_v9  ;;  %v1479_v9 = vld [vmem:[%s2601_s23] ss:$0 sm:$0xff] }
 0x3ce   : > { %v802_v30 = vpack.c.bf16 %v801_v29, %v801_v29 }
 0x3d0   : > { %1548 = vmatmul.mubr.msk.bf16.vlgmr.msra.gmra.mrb[8].mxu0 %vm743_vm2, %v802_v30 }
 0x3d1   : > { %1558 = vmatpush3.bf16.msra.mxu0 %v922_v31  ;;  %1559 = vmatprep.mubr.msk.bf16.mxu0 %vm2011_vm0, %v2010_v0 }
 0x3d2   : > { %1569 = vmatprep.subr.bf16.mxu0 %v2010_v0 }
 0x432   : > { %v911_v32 = vpop.xlane.xlu0 %910 }
 0x433   : > { %1726 = vrcp.f32 %v911_v32 }
 0x43a   : > { %v1023_v33 = vpop.xlane.xlu1 %1022 }
 0x43b   : > { %1728 = vrcp.f32 %v1023_v33 }
 0x43d   : > { %v1727_v34 = vpop.eup %1726 }
 0x43e   : > { %v913_v35 = vmul.f32 %v1727_v34, %v1719_v17  ;;  %v1139_v42 = vpop.permute.xlu1 %1138 }
 0x43f   : > { %v1144_v44 = vsel %vm806_vm3, %v1139_v42, 0 }
 0x440   : > { %v914_v36 = vpack.c.bf16 %v913_v35, %v913_v35 }
 0x442   : > { %v1134_v37 = vpop.xlane.xlu0 %1133  ;;  %1560 = vmatmul.mubr.msk.bf16.vlgmr.msra.gmra.mrb[12].mxu0 %vm743_vm2, %v914_v36 }
 0x443   : > { %1730 = vrcp.f32 %v1134_v37  ;;  %1571 = vmatprep.mubr.msk.bf16.mxu0 %vm2011_vm0, %v2010_v0 }
 0x445   : > { %v1729_v38 = vpop.eup %1728 }
 0x446   : > { %v1025_v39 = vmul.f32 %v1729_v38, %v1721_v22  ;;  %v1028_v40 = vpop.permute.xlu0 %1027 }
 0x447   : > { %v1033_v41 = vsel %vm806_vm3, %v1028_v40, 0 }
 0x448   : > { %1570 = vmatpush3.bf16.msra.mxu0 %v1033_v41  ;;  %v1026_v43 = vpack.c.bf16 %v1025_v39, %v1025_v39 }
 0x449   : > { %1581 = vmatprep.subr.bf16.mxu0 %v2010_v0 }
 0x44b   : > { %1572 = vmatmul.mubr.msk.bf16.vlgmr.msra.gmra.mrb[16].mxu0 %vm743_vm2, %v1026_v43 }
 0x44c   : > { %1582 = vmatpush3.bf16.msra.mxu0 %v1144_v44  ;;  %1583 = vmatprep.mubr.msk.bf16.mxu0 %vm2011_vm0, %v2010_v0 }
 0x44d   : > { %v1731_v45 = vpop.eup %1730 }
 0x44e   : > { %v1136_v46 = vmul.f32 %v1731_v45, %v1723_v24 }
 0x450   : > { %v1137_v47 = vpack.c.bf16 %v1136_v46, %v1136_v46 }
 0x453   : > { %1584 = vmatmul.mubr.msk.bf16.vlgmr.msra.gmra.mrb[20].mxu0 %vm743_vm2, %v1137_v47 }
 0x4a3   : > { %v844_v48 = vpop.f32.mrb[8].mxu0 }
 0x4a4   : > { %v1549_v49 = vpop.f32.mrb[9].mxu0 }
 0x4a5   : > { %v847_v50 = vpop.f32.mrb[10].mxu0 }
 0x4a6   : > { %v1550_v51 = vpop.f32.mrb[11].mxu0 }
 0x515   : > { %v958_v53 = vpop.f32.mrb[12].mxu0 }
 0x516   : > { %1187 = vrot.lane.b32.xlu1 %v958_v53, %s2015_s7  ;;  %v1561_v54 = vpop.f32.mrb[13].mxu0 }
 0x517   : > { %v961_v55 = vpop.f32.mrb[14].mxu0 }
 0x518   : > { %v1562_v56 = vpop.f32.mrb[15].mxu0 }
 0x51e   : > { %v1069_v58 = vpop.f32.mrb[16].mxu0 }
 0x51f   : > { %1191 = vrot.lane.b32.xlu0 %v1069_v58, %s2016_s9  ;;  %v1573_v59 = vpop.f32.mrb[17].mxu0 }
 0x520   : > { %v1072_v60 = vpop.f32.mrb[18].mxu0 }
 0x521   : > { %v1574_v61 = vpop.f32.mrb[19].mxu0 }
 0x526   : > { %v1180_v62 = vpop.f32.mrb[20].mxu0 }
 0x527   : > { %1195 = vrot.lane.b32.xlu1 %v1180_v62, %s2017_s27  ;;  %v1585_v63 = vpop.f32.mrb[21].mxu0 }
 0x528   : > { %v1183_v0 = vpop.f32.mrb[22].mxu0 }
 0x529   : > { %v1586_v1 = vpop.f32.mrb[23].mxu0 }
 0x588   : > { %v1188_v2 = vpop.permute.xlu1 %1187 }
 0x589   : > { %v1198_v4 = vsel %vm743_vm2, %v844_v48, %v1188_v2 }
 0x591   : > { %v1192_v3 = vpop.permute.xlu0 %1191 }
 0x592   : > { %v1200_v5 = vsel %vm1199_vm4, %v1198_v4, %v1192_v3 }
 0x599   : > { %v1196_v6 = vpop.permute.xlu1 %1195 }
 0x59a   : > { %v1202_v7 = vsel %vm1201_vm5, %v1200_v5, %v1196_v6 }
 0x59b   : > { %v1203_v8 = vpack.c.bf16 %v1202_v7, %v1202_v7 }
 0x59d   : > { %1592 = vmatmul.mubr.msk.bf16.vlgmr.msra.gmra.mrb[20].mxu1 %vm564_vm1, %v1203_v8 }
 0x670   : > { %v1264_v10 = vpop.f32.mrb[20].mxu1 }
 0x671   : > { %v1265_v11 = vadd.f32 %v1479_v9, %v1264_v10  ;;  %v1593_v12 = vpop.f32.mrb[21].mxu1 }
 0x672   : > { %v1267_v13 = vpop.f32.mrb[22].mxu1 }
 0x673   : > { %v1594_v14 = vpop.f32.mrb[23].mxu1  ;;  %1270 = vst.msk [vmem:[%s533_s22] sm:$0xff] %vm564_vm1, %v1265_v11 }
 0x674   : > { %1919 = shalt.err (!%p1916_p12)
}
 0x675   : > { %s1920_s3 = scalar_lea.hbm %s2468_s11, 128  ;;  %s1924_s7 = scalar_lea.hbm %s2603_s16, 256 }
 0x676   : > { %p1921_p8 = scmp.ne.s32.totalorder %s2468_s11, %s1920_s3  ;;  %p1925_p5 = scmp.lt.u32.totalorder %s2468_s11, %s2603_s16 }
 0x677   : > { %p1926_p9 = scmp.lt.u32.totalorder %s1924_s7, %s1920_s3  ;;  %p1928_p4 = scmp.lt.u32.totalorder %s1920_s3, %s2468_s11 }
 0x678   : > { %p1922_p11 = pnand %p1921_p8, %p2604_p7 }
 0x679   : > { %p1927_p2 = por %p1926_p9, %p1925_p5 }
 0x67a   : > { %p1923_p10 = pneg %p1922_p11 }
 0x67b   : > { %p1929_p3 = por %p1928_p4, %p1927_p2 }
 0x67d   : > { %p1930_p1 = pnand %p1929_p3, %p1923_p10 }
 0x67f   : > { %1933 = shalt.err (!%p1930_p1)
}
 0x680   : > { %1613 = dma.vmem_to_hbm [thread:$0]  (%p2604_p7), %s2470_s17, 128, %s2468_s11, %s1272_s13  }
 0x681 PF: > { %s2605_s14 = sld [smem:[#allocation19_spill]]  ;;  %s2606_s24 = sld [smem:[#allocation23_spill]] }
 0x682   : > { %s2607_s28 = sld [smem:[#allocation22_spill]] }
 0x687   : > { %s1298_s23 = sand.u32 1, %s2605_s14   ;;  %p2608_p13 = scmp.ne.s32.totalorder %s2606_s24, 0 }
 0x688   : > { %p2609_p6 = scmp.ge.s32.totalorder %s2607_s28, 2  ;;  %s1299_s30 = scalar_lea.sflag [#allocation4], %s1298_s23 }
 0x68a   : > { %p1636_p0 = pnand %p2609_p6, %p2608_p13 }
 0x68c   : > { %1975 = dma.done.wait (!%p1636_p0), %s1299_s30, 128  }
 0x68d   : > { %1977 = vsyncadd (!%p1636_p0), %s1299_s30, 4294967168  ;;  %s32_s22 = sadd.s32 1, %s2607_s28   ;;  %s2610_s25 = sld [smem:[#allocation26_spill]] }
 0x68e   : > { %p29_p12 = scmp.ge.s32.totalorder %s32_s22, 4   ;;  %s2611_s20 = sld [smem:[#allocation21_spill]] }
 0x68f   : > { %s2612_s21 = sld [smem:[#allocation24_spill]]  ;;  %s2613_s17 = smov %s1984_s18 }
 0x690   : > { %s2614_s18 = smov %s1988_s19  ;;  %31 = sbr.rel (!%p29_p12) target bundleno = 18 (0x12), region = 145 }
 0x693   : > { %s2615_s19 = smov %s2610_s25 }
 0x697   :  { %1304 = vsyncpa [#allocation3], 1 }
 0x698   :  { %1306 = vsyncpa [#allocation3 + $0x1], 1 }
 0x699   :  { %1307 = vsyncpa [#allocation6], 1 }
 0x69a   :  { %1309 = vsyncpa [#allocation6 + $0x1], 1 }
 0x69b   :  { %1310 = vsyncpa [#allocation9], 1 }
 0x69c   :  { %1311 = vsyncpa [#allocation12], 1 }
 0x69d   :  { %1312 = vsyncpa [#allocation4], 1 }
 0x69e   :  { %1314 = vsyncpa [#allocation4 + $0x1], 1 }

</bundles_post_ra>
